<compile_context>
chip_gen: v7x
topology: tpu7x:2x2x1
jax: 0.10.0
libtpu: 0.0.40
codegen_flags: <defaults>
</compile_context>

<pallas_src>
from functools import partial

import jax
import jax.numpy as jnp
import numpy as np
from jax.experimental import pallas as pl
from jax.experimental.pallas import tpu as pltpu


_VMEM_LIMIT_BYTES = 48 << 20    # > 16/32 MiB scoped defaults, < 64 MiB v7x physical
_BLOCK_BUDGET_BYTES = 36 << 20  # budget for the Nb-scaled blocks / scratch


def _cdiv(a, b):
    return -(-a // b)


def _round_up(a, m):
    return _cdiv(a, m) * m


def _pick_nb(n_rows, tb, i_in, hidden, mm_bytes, granule):
    """Largest row block (multiple of `granule`, <= 512) fitting the VMEM budget."""
    lane = 128
    ip = _round_up(i_in, lane)
    gp = _round_up(4 * hidden, lane)
    hp = _round_up(hidden, lane)
    per_row = (2 * tb * ip * mm_bytes      # x slab (double-buffered, lane-padded)
               + tb * gp * 4               # f32 gate pre-activation scratch
               + 2 * hp * 4                # h / c state scratch
               + 2 * hp * 4                # output block (double-buffered)
               + 2 * lane * 4)             # lens block (double-buffered)
    fixed = ((_round_up(i_in, 16) + _round_up(hidden, 16)) * gp * mm_bytes  # weights
             + 8 * gp * 4)                                                  # bias
    budget = max(_BLOCK_BUDGET_BYTES - fixed, 4 << 20)
    cap = int((budget // per_row) // granule * granule)
    cap = max(granule, min(cap, 512))      # > 512 rows: diminishing returns
    if n_rows <= cap:
        if n_rows >= 256:
            # Split in two so 2-TC chips (v7x) shard the "parallel" N axis while
            # each block still fills the MXU row dimension.
            return _round_up(_cdiv(n_rows, 2), granule)
        return n_rows
    return cap


def _drnn_lstm_kernel(x_ref, wih_ref, whh_ref, b_ref, lens_ref, hout_ref,
                      proj_scr, h_scr, c_scr):
    """One grid step == Tb LSTM time steps for one Nb-row block.

    x_ref:    (Tb, Nb, I)   raw inputs, time-major (matmul dtype)
    wih_ref:  (I, 4H)       W_ih^T, gates concatenated on lanes (VMEM-resident)
    whh_ref:  (H, 4H)       W_hh^T, gates concatenated on lanes (VMEM-resident)
    b_ref:    (1, 4H)       b_ih + b_hh, f32 (VMEM-resident)
    lens_ref: (Nb, 1)       per-sequence lengths (0 for padded / invalid rows)
    hout_ref: (Nb, H)       final hidden state (written on the last T block)
    proj_scr: (Tb, Nb, 4H)  f32 scratch: x @ W_ih^T + b for this block
    h_scr/c_scr: (Nb, H)    f32 recurrent state, carried across T blocks
    """
    t_blk = pl.program_id(1)
    tb, nb, i_in = x_ref.shape
    hidden = h_scr.shape[-1]

    @pl.when(t_blk == 0)
    def _():
        h_scr[...] = jnp.zeros_like(h_scr)
        c_scr[...] = jnp.zeros_like(c_scr)

    # T-parallel input projection: ONE (Tb*Nb, I) @ (I, 4H) MXU matmul per
    # block; bias is added in f32 (only matmul operands are low precision).
    x_blk = x_ref[...].reshape(tb * nb, i_in)
    proj = jnp.dot(x_blk, wih_ref[...], preferred_element_type=jnp.float32)
    proj_scr[...] = proj.reshape(tb, nb, 4 * hidden) + b_ref[...]

    lens = lens_ref[...]                       # (Nb, 1) int32
    t0 = t_blk * tb
    whh = whh_ref[...]                         # hoisted: read once per time block
    mm_dtype = whh.dtype

    def step(i, carry):
        h, c = carry
        # Single fused recurrent matmul: all four gates, lane-dense (Nb, 4H).
        rec = jnp.dot(h.astype(mm_dtype), whh,
                      preferred_element_type=jnp.float32)
        gates = proj_scr[i] + rec              # (Nb, 4H) f32 pre-activations
        # PyTorch LSTM gate order along lanes: input, forget, cell(g), output.
        # sigmoid(x) == 0.5*tanh(0.5*x)+0.5: one EUP op per gate (vs exp+div).
        i_g = 0.5 * jnp.tanh(0.5 * gates[:, 0 * hidden:1 * hidden]) + 0.5
        f_g = 0.5 * jnp.tanh(0.5 * gates[:, 1 * hidden:2 * hidden]) + 0.5
        g_g = jnp.tanh(gates[:, 2 * hidden:3 * hidden])
        o_g = 0.5 * jnp.tanh(0.5 * gates[:, 3 * hidden:4 * hidden]) + 0.5
        c_new = f_g * c + i_g * g_g
        h_new = o_g * jnp.tanh(c_new)
        # Packed-sequence semantics: freeze state once t >= sequence length.
        mask = (t0 + i) < lens                 # (Nb, 1) -> broadcast over (Nb, H)
        return jnp.where(mask, h_new, h), jnp.where(mask, c_new, c)

    unroll = True if tb <= 16 else 8           # partial unroll for long time blocks
    h, c = jax.lax.fori_loop(0, tb, step, (h_scr[...], c_scr[...]),
                             unroll=unroll)
    h_scr[...] = h
    c_scr[...] = c

    @pl.when(t_blk == pl.num_programs(1) - 1)
    def _():
        hout_ref[...] = h.astype(hout_ref.dtype)


@partial(jax.jit, static_argnames=("tb", "nb", "matmul_dtype"))
def drnn_encoder_forward(x, lengths, utterance_lengths, params, *,
                         tb=16, nb=None, matmul_dtype=jnp.bfloat16):
    """x: (B, U, T, I); lengths: (B, U); utterance_lengths: (B,) -> (B, U, O)."""
    B, U, T, I = x.shape
    W_ih = params["W_ih"].astype(jnp.float32)                    # (4H, I)
    W_hh = params["W_hh"].astype(jnp.float32)                    # (4H, H)
    bias = (params["b_ih"] + params["b_hh"]).astype(jnp.float32)  # (4H,)
    W_out = params["W_out"].astype(jnp.float32)                  # (O, H)
    b_out = params["b_out"].astype(jnp.float32)                  # (O,)
    H = W_hh.shape[1]
    O = W_out.shape[0]

    mm_bytes = jnp.dtype(matmul_dtype).itemsize
    granule = 16 if mm_bytes < 4 else 8        # bf16 packs 16 rows per sublane tile

    # ---- time blocking (balanced: Tp - T < num_t) ----
    tb_cap = max(1, min(tb, T))
    num_t = _cdiv(T, tb_cap)
    Tb = _cdiv(T, num_t)
    Tp = num_t * Tb

    # ---- VMEM-budgeted row blocking ----
    N = B * U
    N_g = _round_up(N, granule)
    if nb is not None:
        Nb = _round_up(min(nb, N_g), granule)
    else:
        Nb = _pick_nb(N_g, Tb, I, H, mm_bytes, granule)
    Np = _round_up(N, Nb)
    num_n = Np // Nb

    # ---- per-sequence lengths & valid-utterance mask (invalid rows -> len 0) ----
    valid = (jnp.arange(U)[None, :] < utterance_lengths[:, None]).reshape(N)
    lens = jnp.where(valid, lengths.reshape(N), 0).astype(jnp.int32)
    lens_p = jnp.pad(lens, (0, Np - N)).reshape(Np, 1)

    # ---- raw inputs, time-major, padded; ONLY matmul operands are cast ----
    x_tm = jnp.transpose(x.reshape(N, T, I).astype(jnp.float32), (1, 0, 2))
    x_tm = jnp.pad(x_tm, ((0, Tp - T), (0, Np - N), (0, 0)))
    x_tm = x_tm.astype(matmul_dtype)                             # (Tp, Np, I)

    # Gate-concatenated (lane-dense) weight layouts; PyTorch order i, f, g, o.
    WihT = W_ih.T.astype(matmul_dtype)                           # (I, 4H)
    WhhT = W_hh.T.astype(matmul_dtype)                           # (H, 4H)
    bias2 = bias.reshape(1, 4 * H)                               # f32

    grid_spec = pltpu.PrefetchScalarGridSpec(
        num_scalar_prefetch=0,
        grid=(num_n, num_t),                     # (rows parallel, time serial)
        in_specs=[
            pl.BlockSpec((Tb, Nb, I), lambda n, t: (t, n, 0)),        # x slab
            pl.BlockSpec(memory_space=pltpu.MemorySpace.VMEM),        # W_ih^T resident
            pl.BlockSpec(memory_space=pltpu.MemorySpace.VMEM),        # W_hh^T resident
            pl.BlockSpec(memory_space=pltpu.MemorySpace.VMEM),        # bias resident
            pl.BlockSpec((Nb, 1), lambda n, t: (n, 0)),               # lengths
        ],
        out_specs=pl.BlockSpec((Nb, H), lambda n, t: (n, 0)),         # final hidden
        scratch_shapes=[
            pltpu.VMEM((Tb, Nb, 4 * H), jnp.float32),   # gate pre-activations
            pltpu.VMEM((Nb, H), jnp.float32),           # h carry
            pltpu.VMEM((Nb, H), jnp.float32),           # c carry
        ],
    )

    h_final = pl.pallas_call(
        _drnn_lstm_kernel,
        out_shape=jax.ShapeDtypeStruct((Np, H), jnp.float32),
        grid_spec=grid_spec,
        compiler_params=pltpu.CompilerParams(
            dimension_semantics=("parallel", "arbitrary"),
            vmem_limit_bytes=_VMEM_LIMIT_BYTES),
    )(x_tm, WihT, WhhT, bias2, lens_p)

    # ---- Linear head + invalid-utterance masking in XLA (lane-dense, off the
    #      serial path; W_out / b_out never occupy kernel VMEM) ----
    out = jnp.dot(h_final[:N], W_out.T) + b_out[None, :]
    out = jnp.where(valid[:, None], out, 0.0)
    return out.reshape(B, U, O)


def _reference_forward(x, lengths, utterance_lengths, params):
    """Pure-JAX reference (same math, lax.scan over time)."""
    B, U, T, I = x.shape
    W_ih = params["W_ih"].astype(jnp.float32)
    W_hh = params["W_hh"].astype(jnp.float32)
    b = (params["b_ih"] + params["b_hh"]).astype(jnp.float32)
    W_out = params["W_out"].astype(jnp.float32)
    b_out = params["b_out"].astype(jnp.float32)
    H = W_hh.shape[1]
    N = B * U

    x_tm = jnp.transpose(x.reshape(N, T, I).astype(jnp.float32), (1, 0, 2))
    valid = (jnp.arange(U)[None, :] < utterance_lengths[:, None]).reshape(N, 1)
    lens = jnp.where(valid, lengths.reshape(N, 1), 0).astype(jnp.int32)

    def step(carry, x_t):
        h, c, t = carry
        gates = x_t @ W_ih.T + h @ W_hh.T + b
        i_g = jax.nn.sigmoid(gates[:, 0 * H:1 * H])
        f_g = jax.nn.sigmoid(gates[:, 1 * H:2 * H])
        g_g = jnp.tanh(gates[:, 2 * H:3 * H])
        o_g = jax.nn.sigmoid(gates[:, 3 * H:4 * H])
        c_new = f_g * c + i_g * g_g
        h_new = o_g * jnp.tanh(c_new)
        m = t < lens
        return (jnp.where(m, h_new, h), jnp.where(m, c_new, c), t + 1), None

    init = (jnp.zeros((N, H), jnp.float32), jnp.zeros((N, H), jnp.float32),
            jnp.int32(0))
    (h, _, _), _ = jax.lax.scan(step, init, x_tm)
    out = h @ W_out.T + b_out
    out = jnp.where(valid, out, 0.0)
    return out.reshape(B, U, -1)


if __name__ == "__main__":
    def make_params(key, I, H, O):
        keys = jax.random.split(key, 6)
        scale = 1.0 / np.sqrt(H)
        return {
            "W_ih": jax.random.uniform(keys[0], (4 * H, I), jnp.float32, -scale, scale),
            "W_hh": jax.random.uniform(keys[1], (4 * H, H), jnp.float32, -scale, scale),
            "b_ih": jax.random.uniform(keys[2], (4 * H,), jnp.float32, -scale, scale),
            "b_hh": jax.random.uniform(keys[3], (4 * H,), jnp.float32, -scale, scale),
            "W_out": jax.random.uniform(keys[4], (O, H), jnp.float32, -scale, scale),
            "b_out": jax.random.uniform(keys[5], (O,), jnp.float32, -scale, scale),
        }

    def make_inputs(key, B, U, T, I):
        kx, kl, ku = jax.random.split(key, 3)
        x = jax.random.normal(kx, (B, U, T, I), jnp.float32)
        lengths = jax.random.randint(kl, (B, U), 1, T + 1).astype(jnp.int32)
        utterance_lengths = jax.random.randint(ku, (B,), 1, U + 1).astype(jnp.int32)
        return x, lengths, utterance_lengths

    key = jax.random.PRNGKey(0)
    kp, ki1, ki2, ki3 = jax.random.split(key, 4)

    # ---- main config ----
    B, U, T, I, H, O = 2, 4, 8, 16, 32, 16
    params = make_params(kp, I, H, O)
    x, lengths, utt_lens = make_inputs(ki1, B, U, T, I)
    ref = _reference_forward(x, lengths, utt_lens, params)

    # f32 MXU path (tight tolerance)
    out_f32 = jax.block_until_ready(
        drnn_encoder_forward(x, lengths, utt_lens, params,
                             matmul_dtype=jnp.float32))
    assert out_f32.shape == (B, U, O)
    np.testing.assert_allclose(np.asarray(out_f32), np.asarray(ref),
                               rtol=1e-4, atol=1e-4)

    # default bf16 matmul-operand path (state / gates stay f32)
    out_bf16 = jax.block_until_ready(
        drnn_encoder_forward(x, lengths, utt_lens, params))
    np.testing.assert_allclose(np.asarray(out_bf16), np.asarray(ref),
                               rtol=5e-2, atol=5e-2)

    # multiple time blocks (T split into Tb blocks, state carried across blocks)
    out_tb = jax.block_until_ready(
        drnn_encoder_forward(x, lengths, utt_lens, params, tb=4,
                             matmul_dtype=jnp.float32))
    np.testing.assert_allclose(np.asarray(out_tb), np.asarray(ref),
                               rtol=1e-4, atol=1e-4)

    # ---- ragged config: N=6 rows padded to the row granule, T=7 ----
    B2, U2, T2 = 2, 3, 7
    x2, lengths2, utt_lens2 = make_inputs(ki2, B2, U2, T2, I)
    ref2 = _reference_forward(x2, lengths2, utt_lens2, params)
    out2 = jax.block_until_ready(
        drnn_encoder_forward(x2, lengths2, utt_lens2, params,
                             matmul_dtype=jnp.float32))
    assert out2.shape == (B2, U2, O)
    np.testing.assert_allclose(np.asarray(out2), np.asarray(ref2),
                               rtol=1e-4, atol=1e-4)

    # ---- multiple row blocks AND time blocks: grid = (3, 2) ----
    B3, U3, T3 = 2, 12, 5
    x3, lengths3, utt_lens3 = make_inputs(ki3, B3, U3, T3, I)
    ref3 = _reference_forward(x3, lengths3, utt_lens3, params)
    out3 = jax.block_until_ready(
        drnn_encoder_forward(x3, lengths3, utt_lens3, params, tb=3, nb=8,
                             matmul_dtype=jnp.float32))
    np.testing.assert_allclose(np.asarray(out3), np.asarray(ref3),
                               rtol=1e-4, atol=1e-4)

    print("KERNEL_OK")
</pallas_src>

<mosaic_0001>
module attributes {stable_mosaic.version = 11 : i64} {
  func.func @_drnn_lstm_kernel(%arg0: i32, %arg1: i32, %arg2: memref<8x8x16xf32, #tpu.memory_space<vmem>>, %arg3: memref<16x128xf32, #tpu.memory_space<vmem>>, %arg4: memref<32x128xf32, #tpu.memory_space<vmem>>, %arg5: memref<1x128xf32, #tpu.memory_space<vmem>>, %arg6: memref<8x1xi32, #tpu.memory_space<vmem>>, %arg7: memref<8x32xf32, #tpu.memory_space<vmem>>, %arg8: memref<8x8x128xf32, #tpu.memory_space<vmem>>, %arg9: memref<8x32xf32, #tpu.memory_space<vmem>>, %arg10: memref<8x32xf32, #tpu.memory_space<vmem>>) attributes {dimension_semantics = [#tpu.dimension_semantics<parallel>, #tpu.dimension_semantics<arbitrary>], iteration_bounds = array<i64: 1, 1>, scalar_prefetch = 0 : i64, scratch_operands = 3 : i64, tpu.core_type = #tpu.core_type<tc>, window_params = [{transform_indices = @transform_0, window_bounds = array<i64: 8, 8, 16>}, {pipeline_mode = #tpu.pipeline_mode<synchronous>, transform_indices = @transform_1, window_bounds = array<i64: 16, 128>}, {pipeline_mode = #tpu.pipeline_mode<synchronous>, transform_indices = @transform_2, window_bounds = array<i64: 32, 128>}, {pipeline_mode = #tpu.pipeline_mode<synchronous>, transform_indices = @transform_3, window_bounds = array<i64: 1, 128>}, {transform_indices = @transform_4, window_bounds = array<i64: 8, 1>}, {transform_indices = @transform_5, window_bounds = array<i64: 8, 32>}]} {
    %c0_i32 = arith.constant 0 : i32
    %0 = arith.cmpi eq, %arg1, %c0_i32 : i32
    %1 = arith.extui %0 : i1 to i32
    %c0_i32_0 = arith.constant 0 : i32
    %2 = arith.cmpi ne, %1, %c0_i32_0 : i32
    scf.if %2 {
      %cst_122 = arith.constant 0.000000e+00 : f32
      %383 = vector.broadcast %cst_122 : f32 to vector<8x32xf32>
      %c0_123 = arith.constant 0 : index
      %c0_124 = arith.constant 0 : index
      %384 = vector.load %arg9[%c0_123, %c0_124] : memref<8x32xf32, #tpu.memory_space<vmem>>, vector<8x32xf32>
      tpu.vector_store %arg9[%c0_123, %c0_124], %383 {strides = array<i32>} : memref<8x32xf32, #tpu.memory_space<vmem>>, vector<8x32xf32>,
      %cst_125 = arith.constant 0.000000e+00 : f32
      %385 = vector.broadcast %cst_125 : f32 to vector<8x32xf32>
      %c0_126 = arith.constant 0 : index
      %c0_127 = arith.constant 0 : index
      %386 = vector.load %arg10[%c0_126, %c0_127] : memref<8x32xf32, #tpu.memory_space<vmem>>, vector<8x32xf32>
      tpu.vector_store %arg10[%c0_126, %c0_127], %385 {strides = array<i32>} : memref<8x32xf32, #tpu.memory_space<vmem>>, vector<8x32xf32>,
    } else {
    }
    %c0 = arith.constant 0 : index
    %c0_1 = arith.constant 0 : index
    %c0_2 = arith.constant 0 : index
    %3 = vector.load %arg2[%c0, %c0_1, %c0_2] : memref<8x8x16xf32, #tpu.memory_space<vmem>>, vector<8x8x16xf32>
    %4 = vector.shape_cast %3 : vector<8x8x16xf32> to vector<64x16xf32>
    %c0_3 = arith.constant 0 : index
    %c0_4 = arith.constant 0 : index
    %5 = vector.load %arg3[%c0_3, %c0_4] : memref<16x128xf32, #tpu.memory_space<vmem>>, vector<16x128xf32>
    %cst = arith.constant dense<0.000000e+00> : vector<64x128xf32>
    %6 = tpu.matmul %4, %5, %cst {dimension_numbers = #tpu.dot_dimension_numbers<[1], [0], [0], [1], [0, 0, 1, 1], [], []>} : vector<64x16xf32>, vector<16x128xf32>, vector<64x128xf32> -> vector<64x128xf32>
    %7 = vector.shape_cast %6 : vector<64x128xf32> to vector<8x8x128xf32>
    %c0_5 = arith.constant 0 : index
    %c0_6 = arith.constant 0 : index
    %8 = vector.load %arg5[%c0_5, %c0_6] : memref<1x128xf32, #tpu.memory_space<vmem>>, vector<1x128xf32>
    %9 = vector.shape_cast %8 : vector<1x128xf32> to vector<1x1x128xf32>
    %10 = vector.broadcast %9 : vector<1x1x128xf32> to vector<8x8x128xf32>
    %11 = arith.addf %7, %10 : vector<8x8x128xf32>
    %c0_7 = arith.constant 0 : index
    %c0_8 = arith.constant 0 : index
    %c0_9 = arith.constant 0 : index
    %12 = vector.load %arg8[%c0_7, %c0_8, %c0_9] : memref<8x8x128xf32, #tpu.memory_space<vmem>>, vector<8x8x128xf32>
    tpu.vector_store %arg8[%c0_7, %c0_8, %c0_9], %11 {strides = array<i32>} : memref<8x8x128xf32, #tpu.memory_space<vmem>>, vector<8x8x128xf32>,
    %c0_10 = arith.constant 0 : index
    %c0_11 = arith.constant 0 : index
    %13 = vector.load %arg6[%c0_10, %c0_11] : memref<8x1xi32, #tpu.memory_space<vmem>>, vector<8x1xi32>
    %c8_i32 = arith.constant 8 : i32
    %14 = arith.muli %arg1, %c8_i32 : i32
    %c0_12 = arith.constant 0 : index
    %c0_13 = arith.constant 0 : index
    %15 = vector.load %arg4[%c0_12, %c0_13] : memref<32x128xf32, #tpu.memory_space<vmem>>, vector<32x128xf32>
    %c0_14 = arith.constant 0 : index
    %c0_15 = arith.constant 0 : index
    %16 = vector.load %arg9[%c0_14, %c0_15] : memref<8x32xf32, #tpu.memory_space<vmem>>, vector<8x32xf32>
    %c0_16 = arith.constant 0 : index
    %c0_17 = arith.constant 0 : index
    %17 = vector.load %arg10[%c0_16, %c0_17] : memref<8x32xf32, #tpu.memory_space<vmem>>, vector<8x32xf32>
    %c0_i32_18 = arith.constant 0 : i32
    %cst_19 = arith.constant dense<0.000000e+00> : vector<8x128xf32>
    %18 = tpu.matmul %16, %15, %cst_19 {dimension_numbers = #tpu.dot_dimension_numbers<[1], [0], [0], [1], [0, 0, 1, 1], [], []>} : vector<8x32xf32>, vector<32x128xf32>, vector<8x128xf32> -> vector<8x128xf32>
    %19 = arith.index_cast %c0_i32_18 : i32 to index
    %c0_20 = arith.constant 0 : index
    %c0_21 = arith.constant 0 : index
    %20 = vector.load %arg8[%19, %c0_20, %c0_21] : memref<8x8x128xf32, #tpu.memory_space<vmem>>, vector<1x8x128xf32>
    %21 = vector.shape_cast %20 : vector<1x8x128xf32> to vector<8x128xf32>
    %22 = arith.addf %21, %18 : vector<8x128xf32>
    %23 = vector.extract_strided_slice %22 {offsets = [0, 0], sizes = [8, 32], strides = [1, 1]} : vector<8x128xf32> to vector<8x32xf32>
    %cst_22 = arith.constant 5.000000e-01 : f32
    %24 = vector.broadcast %cst_22 : f32 to vector<8x32xf32>
    %25 = arith.mulf %24, %23 : vector<8x32xf32>
    %26 = math.tanh %25 : vector<8x32xf32>
    %cst_23 = arith.constant 5.000000e-01 : f32
    %27 = vector.broadcast %cst_23 : f32 to vector<8x32xf32>
    %28 = arith.mulf %27, %26 : vector<8x32xf32>
    %cst_24 = arith.constant 5.000000e-01 : f32
    %29 = vector.broadcast %cst_24 : f32 to vector<8x32xf32>
    %30 = arith.addf %28, %29 : vector<8x32xf32>
    %31 = vector.extract_strided_slice %22 {offsets = [0, 32], sizes = [8, 32], strides = [1, 1]} : vector<8x128xf32> to vector<8x32xf32>
    %cst_25 = arith.constant 5.000000e-01 : f32
    %32 = vector.broadcast %cst_25 : f32 to vector<8x32xf32>
    %33 = arith.mulf %32, %31 : vector<8x32xf32>
    %34 = math.tanh %33 : vector<8x32xf32>
    %cst_26 = arith.constant 5.000000e-01 : f32
    %35 = vector.broadcast %cst_26 : f32 to vector<8x32xf32>
    %36 = arith.mulf %35, %34 : vector<8x32xf32>
    %cst_27 = arith.constant 5.000000e-01 : f32
    %37 = vector.broadcast %cst_27 : f32 to vector<8x32xf32>
    %38 = arith.addf %36, %37 : vector<8x32xf32>
    %39 = vector.extract_strided_slice %22 {offsets = [0, 64], sizes = [8, 32], strides = [1, 1]} : vector<8x128xf32> to vector<8x32xf32>
    %40 = math.tanh %39 : vector<8x32xf32>
    %41 = vector.extract_strided_slice %22 {offsets = [0, 96], sizes = [8, 32], strides = [1, 1]} : vector<8x128xf32> to vector<8x32xf32>
    %cst_28 = arith.constant 5.000000e-01 : f32
    %42 = vector.broadcast %cst_28 : f32 to vector<8x32xf32>
    %43 = arith.mulf %42, %41 : vector<8x32xf32>
    %44 = math.tanh %43 : vector<8x32xf32>
    %cst_29 = arith.constant 5.000000e-01 : f32
    %45 = vector.broadcast %cst_29 : f32 to vector<8x32xf32>
    %46 = arith.mulf %45, %44 : vector<8x32xf32>
    %cst_30 = arith.constant 5.000000e-01 : f32
    %47 = vector.broadcast %cst_30 : f32 to vector<8x32xf32>
    %48 = arith.addf %46, %47 : vector<8x32xf32>
    %49 = arith.mulf %38, %17 : vector<8x32xf32>
    %50 = arith.mulf %30, %40 : vector<8x32xf32>
    %51 = arith.addf %49, %50 : vector<8x32xf32>
    %52 = math.tanh %51 : vector<8x32xf32>
    %53 = arith.mulf %48, %52 : vector<8x32xf32>
    %54 = arith.addi %14, %c0_i32_18 : i32
    %55 = vector.broadcast %54 : i32 to vector<8x1xi32>
    %56 = arith.cmpi slt, %55, %13 : vector<8x1xi32>
    %57 = vector.shape_cast %56 : vector<8x1xi1> to vector<8x1xi1>
    %58 = vector.broadcast %57 : vector<8x1xi1> to vector<8x32xi1>
    %59 = arith.select %58, %53, %16 : vector<8x32xi1>, vector<8x32xf32>
    %60 = vector.shape_cast %56 : vector<8x1xi1> to vector<8x1xi1>
    %61 = vector.broadcast %60 : vector<8x1xi1> to vector<8x32xi1>
    %62 = arith.select %61, %51, %17 : vector<8x32xi1>, vector<8x32xf32>
    %c1_i32 = arith.constant 1 : i32
    %cst_31 = arith.constant dense<0.000000e+00> : vector<8x128xf32>
    %63 = tpu.matmul %59, %15, %cst_31 {dimension_numbers = #tpu.dot_dimension_numbers<[1], [0], [0], [1], [0, 0, 1, 1], [], []>} : vector<8x32xf32>, vector<32x128xf32>, vector<8x128xf32> -> vector<8x128xf32>
    %64 = arith.index_cast %c1_i32 : i32 to index
    %c0_32 = arith.constant 0 : index
    %c0_33 = arith.constant 0 : index
    %65 = vector.load %arg8[%64, %c0_32, %c0_33] : memref<8x8x128xf32, #tpu.memory_space<vmem>>, vector<1x8x128xf32>
    %66 = vector.shape_cast %65 : vector<1x8x128xf32> to vector<8x128xf32>
    %67 = arith.addf %66, %63 : vector<8x128xf32>
    %68 = vector.extract_strided_slice %67 {offsets = [0, 0], sizes = [8, 32], strides = [1, 1]} : vector<8x128xf32> to vector<8x32xf32>
    %cst_34 = arith.constant 5.000000e-01 : f32
    %69 = vector.broadcast %cst_34 : f32 to vector<8x32xf32>
    %70 = arith.mulf %69, %68 : vector<8x32xf32>
    %71 = math.tanh %70 : vector<8x32xf32>
    %cst_35 = arith.constant 5.000000e-01 : f32
    %72 = vector.broadcast %cst_35 : f32 to vector<8x32xf32>
    %73 = arith.mulf %72, %71 : vector<8x32xf32>
    %cst_36 = arith.constant 5.000000e-01 : f32
    %74 = vector.broadcast %cst_36 : f32 to vector<8x32xf32>
    %75 = arith.addf %73, %74 : vector<8x32xf32>
    %76 = vector.extract_strided_slice %67 {offsets = [0, 32], sizes = [8, 32], strides = [1, 1]} : vector<8x128xf32> to vector<8x32xf32>
    %cst_37 = arith.constant 5.000000e-01 : f32
    %77 = vector.broadcast %cst_37 : f32 to vector<8x32xf32>
    %78 = arith.mulf %77, %76 : vector<8x32xf32>
    %79 = math.tanh %78 : vector<8x32xf32>
    %cst_38 = arith.constant 5.000000e-01 : f32
    %80 = vector.broadcast %cst_38 : f32 to vector<8x32xf32>
    %81 = arith.mulf %80, %79 : vector<8x32xf32>
    %cst_39 = arith.constant 5.000000e-01 : f32
    %82 = vector.broadcast %cst_39 : f32 to vector<8x32xf32>
    %83 = arith.addf %81, %82 : vector<8x32xf32>
    %84 = vector.extract_strided_slice %67 {offsets = [0, 64], sizes = [8, 32], strides = [1, 1]} : vector<8x128xf32> to vector<8x32xf32>
    %85 = math.tanh %84 : vector<8x32xf32>
    %86 = vector.extract_strided_slice %67 {offsets = [0, 96], sizes = [8, 32], strides = [1, 1]} : vector<8x128xf32> to vector<8x32xf32>
    %cst_40 = arith.constant 5.000000e-01 : f32
    %87 = vector.broadcast %cst_40 : f32 to vector<8x32xf32>
    %88 = arith.mulf %87, %86 : vector<8x32xf32>
    %89 = math.tanh %88 : vector<8x32xf32>
    %cst_41 = arith.constant 5.000000e-01 : f32
    %90 = vector.broadcast %cst_41 : f32 to vector<8x32xf32>
    %91 = arith.mulf %90, %89 : vector<8x32xf32>
    %cst_42 = arith.constant 5.000000e-01 : f32
    %92 = vector.broadcast %cst_42 : f32 to vector<8x32xf32>
    %93 = arith.addf %91, %92 : vector<8x32xf32>
    %94 = arith.mulf %83, %62 : vector<8x32xf32>
    %95 = arith.mulf %75, %85 : vector<8x32xf32>
    %96 = arith.addf %94, %95 : vector<8x32xf32>
    %97 = math.tanh %96 : vector<8x32xf32>
    %98 = arith.mulf %93, %97 : vector<8x32xf32>
    %99 = arith.addi %14, %c1_i32 : i32
    %100 = vector.broadcast %99 : i32 to vector<8x1xi32>
    %101 = arith.cmpi slt, %100, %13 : vector<8x1xi32>
    %102 = vector.shape_cast %101 : vector<8x1xi1> to vector<8x1xi1>
    %103 = vector.broadcast %102 : vector<8x1xi1> to vector<8x32xi1>
    %104 = arith.select %103, %98, %59 : vector<8x32xi1>, vector<8x32xf32>
    %105 = vector.shape_cast %101 : vector<8x1xi1> to vector<8x1xi1>
    %106 = vector.broadcast %105 : vector<8x1xi1> to vector<8x32xi1>
    %107 = arith.select %106, %96, %62 : vector<8x32xi1>, vector<8x32xf32>
    %c2_i32 = arith.constant 2 : i32
    %cst_43 = arith.constant dense<0.000000e+00> : vector<8x128xf32>
    %108 = tpu.matmul %104, %15, %cst_43 {dimension_numbers = #tpu.dot_dimension_numbers<[1], [0], [0], [1], [0, 0, 1, 1], [], []>} : vector<8x32xf32>, vector<32x128xf32>, vector<8x128xf32> -> vector<8x128xf32>
    %109 = arith.index_cast %c2_i32 : i32 to index
    %c0_44 = arith.constant 0 : index
    %c0_45 = arith.constant 0 : index
    %110 = vector.load %arg8[%109, %c0_44, %c0_45] : memref<8x8x128xf32, #tpu.memory_space<vmem>>, vector<1x8x128xf32>
    %111 = vector.shape_cast %110 : vector<1x8x128xf32> to vector<8x128xf32>
    %112 = arith.addf %111, %108 : vector<8x128xf32>
    %113 = vector.extract_strided_slice %112 {offsets = [0, 0], sizes = [8, 32], strides = [1, 1]} : vector<8x128xf32> to vector<8x32xf32>
    %cst_46 = arith.constant 5.000000e-01 : f32
    %114 = vector.broadcast %cst_46 : f32 to vector<8x32xf32>
    %115 = arith.mulf %114, %113 : vector<8x32xf32>
    %116 = math.tanh %115 : vector<8x32xf32>
    %cst_47 = arith.constant 5.000000e-01 : f32
    %117 = vector.broadcast %cst_47 : f32 to vector<8x32xf32>
    %118 = arith.mulf %117, %116 : vector<8x32xf32>
    %cst_48 = arith.constant 5.000000e-01 : f32
    %119 = vector.broadcast %cst_48 : f32 to vector<8x32xf32>
    %120 = arith.addf %118, %119 : vector<8x32xf32>
    %121 = vector.extract_strided_slice %112 {offsets = [0, 32], sizes = [8, 32], strides = [1, 1]} : vector<8x128xf32> to vector<8x32xf32>
    %cst_49 = arith.constant 5.000000e-01 : f32
    %122 = vector.broadcast %cst_49 : f32 to vector<8x32xf32>
    %123 = arith.mulf %122, %121 : vector<8x32xf32>
    %124 = math.tanh %123 : vector<8x32xf32>
    %cst_50 = arith.constant 5.000000e-01 : f32
    %125 = vector.broadcast %cst_50 : f32 to vector<8x32xf32>
    %126 = arith.mulf %125, %124 : vector<8x32xf32>
    %cst_51 = arith.constant 5.000000e-01 : f32
    %127 = vector.broadcast %cst_51 : f32 to vector<8x32xf32>
    %128 = arith.addf %126, %127 : vector<8x32xf32>
    %129 = vector.extract_strided_slice %112 {offsets = [0, 64], sizes = [8, 32], strides = [1, 1]} : vector<8x128xf32> to vector<8x32xf32>
    %130 = math.tanh %129 : vector<8x32xf32>
    %131 = vector.extract_strided_slice %112 {offsets = [0, 96], sizes = [8, 32], strides = [1, 1]} : vector<8x128xf32> to vector<8x32xf32>
    %cst_52 = arith.constant 5.000000e-01 : f32
    %132 = vector.broadcast %cst_52 : f32 to vector<8x32xf32>
    %133 = arith.mulf %132, %131 : vector<8x32xf32>
    %134 = math.tanh %133 : vector<8x32xf32>
    %cst_53 = arith.constant 5.000000e-01 : f32
    %135 = vector.broadcast %cst_53 : f32 to vector<8x32xf32>
    %136 = arith.mulf %135, %134 : vector<8x32xf32>
    %cst_54 = arith.constant 5.000000e-01 : f32
    %137 = vector.broadcast %cst_54 : f32 to vector<8x32xf32>
    %138 = arith.addf %136, %137 : vector<8x32xf32>
    %139 = arith.mulf %128, %107 : vector<8x32xf32>
    %140 = arith.mulf %120, %130 : vector<8x32xf32>
    %141 = arith.addf %139, %140 : vector<8x32xf32>
    %142 = math.tanh %141 : vector<8x32xf32>
    %143 = arith.mulf %138, %142 : vector<8x32xf32>
    %144 = arith.addi %14, %c2_i32 : i32
    %145 = vector.broadcast %144 : i32 to vector<8x1xi32>
    %146 = arith.cmpi slt, %145, %13 : vector<8x1xi32>
    %147 = vector.shape_cast %146 : vector<8x1xi1> to vector<8x1xi1>
    %148 = vector.broadcast %147 : vector<8x1xi1> to vector<8x32xi1>
    %149 = arith.select %148, %143, %104 : vector<8x32xi1>, vector<8x32xf32>
    %150 = vector.shape_cast %146 : vector<8x1xi1> to vector<8x1xi1>
    %151 = vector.broadcast %150 : vector<8x1xi1> to vector<8x32xi1>
    %152 = arith.select %151, %141, %107 : vector<8x32xi1>, vector<8x32xf32>
    %c3_i32 = arith.constant 3 : i32
    %cst_55 = arith.constant dense<0.000000e+00> : vector<8x128xf32>
    %153 = tpu.matmul %149, %15, %cst_55 {dimension_numbers = #tpu.dot_dimension_numbers<[1], [0], [0], [1], [0, 0, 1, 1], [], []>} : vector<8x32xf32>, vector<32x128xf32>, vector<8x128xf32> -> vector<8x128xf32>
    %154 = arith.index_cast %c3_i32 : i32 to index
    %c0_56 = arith.constant 0 : index
    %c0_57 = arith.constant 0 : index
    %155 = vector.load %arg8[%154, %c0_56, %c0_57] : memref<8x8x128xf32, #tpu.memory_space<vmem>>, vector<1x8x128xf32>
    %156 = vector.shape_cast %155 : vector<1x8x128xf32> to vector<8x128xf32>
    %157 = arith.addf %156, %153 : vector<8x128xf32>
    %158 = vector.extract_strided_slice %157 {offsets = [0, 0], sizes = [8, 32], strides = [1, 1]} : vector<8x128xf32> to vector<8x32xf32>
    %cst_58 = arith.constant 5.000000e-01 : f32
    %159 = vector.broadcast %cst_58 : f32 to vector<8x32xf32>
    %160 = arith.mulf %159, %158 : vector<8x32xf32>
    %161 = math.tanh %160 : vector<8x32xf32>
    %cst_59 = arith.constant 5.000000e-01 : f32
    %162 = vector.broadcast %cst_59 : f32 to vector<8x32xf32>
    %163 = arith.mulf %162, %161 : vector<8x32xf32>
    %cst_60 = arith.constant 5.000000e-01 : f32
    %164 = vector.broadcast %cst_60 : f32 to vector<8x32xf32>
    %165 = arith.addf %163, %164 : vector<8x32xf32>
    %166 = vector.extract_strided_slice %157 {offsets = [0, 32], sizes = [8, 32], strides = [1, 1]} : vector<8x128xf32> to vector<8x32xf32>
    %cst_61 = arith.constant 5.000000e-01 : f32
    %167 = vector.broadcast %cst_61 : f32 to vector<8x32xf32>
    %168 = arith.mulf %167, %166 : vector<8x32xf32>
    %169 = math.tanh %168 : vector<8x32xf32>
    %cst_62 = arith.constant 5.000000e-01 : f32
    %170 = vector.broadcast %cst_62 : f32 to vector<8x32xf32>
    %171 = arith.mulf %170, %169 : vector<8x32xf32>
    %cst_63 = arith.constant 5.000000e-01 : f32
    %172 = vector.broadcast %cst_63 : f32 to vector<8x32xf32>
    %173 = arith.addf %171, %172 : vector<8x32xf32>
    %174 = vector.extract_strided_slice %157 {offsets = [0, 64], sizes = [8, 32], strides = [1, 1]} : vector<8x128xf32> to vector<8x32xf32>
    %175 = math.tanh %174 : vector<8x32xf32>
    %176 = vector.extract_strided_slice %157 {offsets = [0, 96], sizes = [8, 32], strides = [1, 1]} : vector<8x128xf32> to vector<8x32xf32>
    %cst_64 = arith.constant 5.000000e-01 : f32
    %177 = vector.broadcast %cst_64 : f32 to vector<8x32xf32>
    %178 = arith.mulf %177, %176 : vector<8x32xf32>
    %179 = math.tanh %178 : vector<8x32xf32>
    %cst_65 = arith.constant 5.000000e-01 : f32
    %180 = vector.broadcast %cst_65 : f32 to vector<8x32xf32>
    %181 = arith.mulf %180, %179 : vector<8x32xf32>
    %cst_66 = arith.constant 5.000000e-01 : f32
    %182 = vector.broadcast %cst_66 : f32 to vector<8x32xf32>
    %183 = arith.addf %181, %182 : vector<8x32xf32>
    %184 = arith.mulf %173, %152 : vector<8x32xf32>
    %185 = arith.mulf %165, %175 : vector<8x32xf32>
    %186 = arith.addf %184, %185 : vector<8x32xf32>
    %187 = math.tanh %186 : vector<8x32xf32>
    %188 = arith.mulf %183, %187 : vector<8x32xf32>
    %189 = arith.addi %14, %c3_i32 : i32
    %190 = vector.broadcast %189 : i32 to vector<8x1xi32>
    %191 = arith.cmpi slt, %190, %13 : vector<8x1xi32>
    %192 = vector.shape_cast %191 : vector<8x1xi1> to vector<8x1xi1>
    %193 = vector.broadcast %192 : vector<8x1xi1> to vector<8x32xi1>
    %194 = arith.select %193, %188, %149 : vector<8x32xi1>, vector<8x32xf32>
    %195 = vector.shape_cast %191 : vector<8x1xi1> to vector<8x1xi1>
    %196 = vector.broadcast %195 : vector<8x1xi1> to vector<8x32xi1>
    %197 = arith.select %196, %186, %152 : vector<8x32xi1>, vector<8x32xf32>
    %c4_i32 = arith.constant 4 : i32
    %cst_67 = arith.constant dense<0.000000e+00> : vector<8x128xf32>
    %198 = tpu.matmul %194, %15, %cst_67 {dimension_numbers = #tpu.dot_dimension_numbers<[1], [0], [0], [1], [0, 0, 1, 1], [], []>} : vector<8x32xf32>, vector<32x128xf32>, vector<8x128xf32> -> vector<8x128xf32>
    %199 = arith.index_cast %c4_i32 : i32 to index
    %c0_68 = arith.constant 0 : index
    %c0_69 = arith.constant 0 : index
    %200 = vector.load %arg8[%199, %c0_68, %c0_69] : memref<8x8x128xf32, #tpu.memory_space<vmem>>, vector<1x8x128xf32>
    %201 = vector.shape_cast %200 : vector<1x8x128xf32> to vector<8x128xf32>
    %202 = arith.addf %201, %198 : vector<8x128xf32>
    %203 = vector.extract_strided_slice %202 {offsets = [0, 0], sizes = [8, 32], strides = [1, 1]} : vector<8x128xf32> to vector<8x32xf32>
    %cst_70 = arith.constant 5.000000e-01 : f32
    %204 = vector.broadcast %cst_70 : f32 to vector<8x32xf32>
    %205 = arith.mulf %204, %203 : vector<8x32xf32>
    %206 = math.tanh %205 : vector<8x32xf32>
    %cst_71 = arith.constant 5.000000e-01 : f32
    %207 = vector.broadcast %cst_71 : f32 to vector<8x32xf32>
    %208 = arith.mulf %207, %206 : vector<8x32xf32>
    %cst_72 = arith.constant 5.000000e-01 : f32
    %209 = vector.broadcast %cst_72 : f32 to vector<8x32xf32>
    %210 = arith.addf %208, %209 : vector<8x32xf32>
    %211 = vector.extract_strided_slice %202 {offsets = [0, 32], sizes = [8, 32], strides = [1, 1]} : vector<8x128xf32> to vector<8x32xf32>
    %cst_73 = arith.constant 5.000000e-01 : f32
    %212 = vector.broadcast %cst_73 : f32 to vector<8x32xf32>
    %213 = arith.mulf %212, %211 : vector<8x32xf32>
    %214 = math.tanh %213 : vector<8x32xf32>
    %cst_74 = arith.constant 5.000000e-01 : f32
    %215 = vector.broadcast %cst_74 : f32 to vector<8x32xf32>
    %216 = arith.mulf %215, %214 : vector<8x32xf32>
    %cst_75 = arith.constant 5.000000e-01 : f32
    %217 = vector.broadcast %cst_75 : f32 to vector<8x32xf32>
    %218 = arith.addf %216, %217 : vector<8x32xf32>
    %219 = vector.extract_strided_slice %202 {offsets = [0, 64], sizes = [8, 32], strides = [1, 1]} : vector<8x128xf32> to vector<8x32xf32>
    %220 = math.tanh %219 : vector<8x32xf32>
    %221 = vector.extract_strided_slice %202 {offsets = [0, 96], sizes = [8, 32], strides = [1, 1]} : vector<8x128xf32> to vector<8x32xf32>
    %cst_76 = arith.constant 5.000000e-01 : f32
    %222 = vector.broadcast %cst_76 : f32 to vector<8x32xf32>
    %223 = arith.mulf %222, %221 : vector<8x32xf32>
    %224 = math.tanh %223 : vector<8x32xf32>
    %cst_77 = arith.constant 5.000000e-01 : f32
    %225 = vector.broadcast %cst_77 : f32 to vector<8x32xf32>
    %226 = arith.mulf %225, %224 : vector<8x32xf32>
    %cst_78 = arith.constant 5.000000e-01 : f32
    %227 = vector.broadcast %cst_78 : f32 to vector<8x32xf32>
    %228 = arith.addf %226, %227 : vector<8x32xf32>
    %229 = arith.mulf %218, %197 : vector<8x32xf32>
    %230 = arith.mulf %210, %220 : vector<8x32xf32>
    %231 = arith.addf %229, %230 : vector<8x32xf32>
    %232 = math.tanh %231 : vector<8x32xf32>
    %233 = arith.mulf %228, %232 : vector<8x32xf32>
    %234 = arith.addi %14, %c4_i32 : i32
    %235 = vector.broadcast %234 : i32 to vector<8x1xi32>
    %236 = arith.cmpi slt, %235, %13 : vector<8x1xi32>
    %237 = vector.shape_cast %236 : vector<8x1xi1> to vector<8x1xi1>
    %238 = vector.broadcast %237 : vector<8x1xi1> to vector<8x32xi1>
    %239 = arith.select %238, %233, %194 : vector<8x32xi1>, vector<8x32xf32>
    %240 = vector.shape_cast %236 : vector<8x1xi1> to vector<8x1xi1>
    %241 = vector.broadcast %240 : vector<8x1xi1> to vector<8x32xi1>
    %242 = arith.select %241, %231, %197 : vector<8x32xi1>, vector<8x32xf32>
    %c5_i32 = arith.constant 5 : i32
    %cst_79 = arith.constant dense<0.000000e+00> : vector<8x128xf32>
    %243 = tpu.matmul %239, %15, %cst_79 {dimension_numbers = #tpu.dot_dimension_numbers<[1], [0], [0], [1], [0, 0, 1, 1], [], []>} : vector<8x32xf32>, vector<32x128xf32>, vector<8x128xf32> -> vector<8x128xf32>
    %244 = arith.index_cast %c5_i32 : i32 to index
    %c0_80 = arith.constant 0 : index
    %c0_81 = arith.constant 0 : index
    %245 = vector.load %arg8[%244, %c0_80, %c0_81] : memref<8x8x128xf32, #tpu.memory_space<vmem>>, vector<1x8x128xf32>
    %246 = vector.shape_cast %245 : vector<1x8x128xf32> to vector<8x128xf32>
    %247 = arith.addf %246, %243 : vector<8x128xf32>
    %248 = vector.extract_strided_slice %247 {offsets = [0, 0], sizes = [8, 32], strides = [1, 1]} : vector<8x128xf32> to vector<8x32xf32>
    %cst_82 = arith.constant 5.000000e-01 : f32
    %249 = vector.broadcast %cst_82 : f32 to vector<8x32xf32>
    %250 = arith.mulf %249, %248 : vector<8x32xf32>
    %251 = math.tanh %250 : vector<8x32xf32>
    %cst_83 = arith.constant 5.000000e-01 : f32
    %252 = vector.broadcast %cst_83 : f32 to vector<8x32xf32>
    %253 = arith.mulf %252, %251 : vector<8x32xf32>
    %cst_84 = arith.constant 5.000000e-01 : f32
    %254 = vector.broadcast %cst_84 : f32 to vector<8x32xf32>
    %255 = arith.addf %253, %254 : vector<8x32xf32>
    %256 = vector.extract_strided_slice %247 {offsets = [0, 32], sizes = [8, 32], strides = [1, 1]} : vector<8x128xf32> to vector<8x32xf32>
    %cst_85 = arith.constant 5.000000e-01 : f32
    %257 = vector.broadcast %cst_85 : f32 to vector<8x32xf32>
    %258 = arith.mulf %257, %256 : vector<8x32xf32>
    %259 = math.tanh %258 : vector<8x32xf32>
    %cst_86 = arith.constant 5.000000e-01 : f32
    %260 = vector.broadcast %cst_86 : f32 to vector<8x32xf32>
    %261 = arith.mulf %260, %259 : vector<8x32xf32>
    %cst_87 = arith.constant 5.000000e-01 : f32
    %262 = vector.broadcast %cst_87 : f32 to vector<8x32xf32>
    %263 = arith.addf %261, %262 : vector<8x32xf32>
    %264 = vector.extract_strided_slice %247 {offsets = [0, 64], sizes = [8, 32], strides = [1, 1]} : vector<8x128xf32> to vector<8x32xf32>
    %265 = math.tanh %264 : vector<8x32xf32>
    %266 = vector.extract_strided_slice %247 {offsets = [0, 96], sizes = [8, 32], strides = [1, 1]} : vector<8x128xf32> to vector<8x32xf32>
    %cst_88 = arith.constant 5.000000e-01 : f32
    %267 = vector.broadcast %cst_88 : f32 to vector<8x32xf32>
    %268 = arith.mulf %267, %266 : vector<8x32xf32>
    %269 = math.tanh %268 : vector<8x32xf32>
    %cst_89 = arith.constant 5.000000e-01 : f32
    %270 = vector.broadcast %cst_89 : f32 to vector<8x32xf32>
    %271 = arith.mulf %270, %269 : vector<8x32xf32>
    %cst_90 = arith.constant 5.000000e-01 : f32
    %272 = vector.broadcast %cst_90 : f32 to vector<8x32xf32>
    %273 = arith.addf %271, %272 : vector<8x32xf32>
    %274 = arith.mulf %263, %242 : vector<8x32xf32>
    %275 = arith.mulf %255, %265 : vector<8x32xf32>
    %276 = arith.addf %274, %275 : vector<8x32xf32>
    %277 = math.tanh %276 : vector<8x32xf32>
    %278 = arith.mulf %273, %277 : vector<8x32xf32>
    %279 = arith.addi %14, %c5_i32 : i32
    %280 = vector.broadcast %279 : i32 to vector<8x1xi32>
    %281 = arith.cmpi slt, %280, %13 : vector<8x1xi32>
    %282 = vector.shape_cast %281 : vector<8x1xi1> to vector<8x1xi1>
    %283 = vector.broadcast %282 : vector<8x1xi1> to vector<8x32xi1>
    %284 = arith.select %283, %278, %239 : vector<8x32xi1>, vector<8x32xf32>
    %285 = vector.shape_cast %281 : vector<8x1xi1> to vector<8x1xi1>
    %286 = vector.broadcast %285 : vector<8x1xi1> to vector<8x32xi1>
    %287 = arith.select %286, %276, %242 : vector<8x32xi1>, vector<8x32xf32>
    %c6_i32 = arith.constant 6 : i32
    %cst_91 = arith.constant dense<0.000000e+00> : vector<8x128xf32>
    %288 = tpu.matmul %284, %15, %cst_91 {dimension_numbers = #tpu.dot_dimension_numbers<[1], [0], [0], [1], [0, 0, 1, 1], [], []>} : vector<8x32xf32>, vector<32x128xf32>, vector<8x128xf32> -> vector<8x128xf32>
    %289 = arith.index_cast %c6_i32 : i32 to index
    %c0_92 = arith.constant 0 : index
    %c0_93 = arith.constant 0 : index
    %290 = vector.load %arg8[%289, %c0_92, %c0_93] : memref<8x8x128xf32, #tpu.memory_space<vmem>>, vector<1x8x128xf32>
    %291 = vector.shape_cast %290 : vector<1x8x128xf32> to vector<8x128xf32>
    %292 = arith.addf %291, %288 : vector<8x128xf32>
    %293 = vector.extract_strided_slice %292 {offsets = [0, 0], sizes = [8, 32], strides = [1, 1]} : vector<8x128xf32> to vector<8x32xf32>
    %cst_94 = arith.constant 5.000000e-01 : f32
    %294 = vector.broadcast %cst_94 : f32 to vector<8x32xf32>
    %295 = arith.mulf %294, %293 : vector<8x32xf32>
    %296 = math.tanh %295 : vector<8x32xf32>
    %cst_95 = arith.constant 5.000000e-01 : f32
    %297 = vector.broadcast %cst_95 : f32 to vector<8x32xf32>
    %298 = arith.mulf %297, %296 : vector<8x32xf32>
    %cst_96 = arith.constant 5.000000e-01 : f32
    %299 = vector.broadcast %cst_96 : f32 to vector<8x32xf32>
    %300 = arith.addf %298, %299 : vector<8x32xf32>
    %301 = vector.extract_strided_slice %292 {offsets = [0, 32], sizes = [8, 32], strides = [1, 1]} : vector<8x128xf32> to vector<8x32xf32>
    %cst_97 = arith.constant 5.000000e-01 : f32
    %302 = vector.broadcast %cst_97 : f32 to vector<8x32xf32>
    %303 = arith.mulf %302, %301 : vector<8x32xf32>
    %304 = math.tanh %303 : vector<8x32xf32>
    %cst_98 = arith.constant 5.000000e-01 : f32
    %305 = vector.broadcast %cst_98 : f32 to vector<8x32xf32>
    %306 = arith.mulf %305, %304 : vector<8x32xf32>
    %cst_99 = arith.constant 5.000000e-01 : f32
    %307 = vector.broadcast %cst_99 : f32 to vector<8x32xf32>
    %308 = arith.addf %306, %307 : vector<8x32xf32>
    %309 = vector.extract_strided_slice %292 {offsets = [0, 64], sizes = [8, 32], strides = [1, 1]} : vector<8x128xf32> to vector<8x32xf32>
    %310 = math.tanh %309 : vector<8x32xf32>
    %311 = vector.extract_strided_slice %292 {offsets = [0, 96], sizes = [8, 32], strides = [1, 1]} : vector<8x128xf32> to vector<8x32xf32>
    %cst_100 = arith.constant 5.000000e-01 : f32
    %312 = vector.broadcast %cst_100 : f32 to vector<8x32xf32>
    %313 = arith.mulf %312, %311 : vector<8x32xf32>
    %314 = math.tanh %313 : vector<8x32xf32>
    %cst_101 = arith.constant 5.000000e-01 : f32
    %315 = vector.broadcast %cst_101 : f32 to vector<8x32xf32>
    %316 = arith.mulf %315, %314 : vector<8x32xf32>
    %cst_102 = arith.constant 5.000000e-01 : f32
    %317 = vector.broadcast %cst_102 : f32 to vector<8x32xf32>
    %318 = arith.addf %316, %317 : vector<8x32xf32>
    %319 = arith.mulf %308, %287 : vector<8x32xf32>
    %320 = arith.mulf %300, %310 : vector<8x32xf32>
    %321 = arith.addf %319, %320 : vector<8x32xf32>
    %322 = math.tanh %321 : vector<8x32xf32>
    %323 = arith.mulf %318, %322 : vector<8x32xf32>
    %324 = arith.addi %14, %c6_i32 : i32
    %325 = vector.broadcast %324 : i32 to vector<8x1xi32>
    %326 = arith.cmpi slt, %325, %13 : vector<8x1xi32>
    %327 = vector.shape_cast %326 : vector<8x1xi1> to vector<8x1xi1>
    %328 = vector.broadcast %327 : vector<8x1xi1> to vector<8x32xi1>
    %329 = arith.select %328, %323, %284 : vector<8x32xi1>, vector<8x32xf32>
    %330 = vector.shape_cast %326 : vector<8x1xi1> to vector<8x1xi1>
    %331 = vector.broadcast %330 : vector<8x1xi1> to vector<8x32xi1>
    %332 = arith.select %331, %321, %287 : vector<8x32xi1>, vector<8x32xf32>
    %c7_i32 = arith.constant 7 : i32
    %cst_103 = arith.constant dense<0.000000e+00> : vector<8x128xf32>
    %333 = tpu.matmul %329, %15, %cst_103 {dimension_numbers = #tpu.dot_dimension_numbers<[1], [0], [0], [1], [0, 0, 1, 1], [], []>} : vector<8x32xf32>, vector<32x128xf32>, vector<8x128xf32> -> vector<8x128xf32>
    %334 = arith.index_cast %c7_i32 : i32 to index
    %c0_104 = arith.constant 0 : index
    %c0_105 = arith.constant 0 : index
    %335 = vector.load %arg8[%334, %c0_104, %c0_105] : memref<8x8x128xf32, #tpu.memory_space<vmem>>, vector<1x8x128xf32>
    %336 = vector.shape_cast %335 : vector<1x8x128xf32> to vector<8x128xf32>
    %337 = arith.addf %336, %333 : vector<8x128xf32>
    %338 = vector.extract_strided_slice %337 {offsets = [0, 0], sizes = [8, 32], strides = [1, 1]} : vector<8x128xf32> to vector<8x32xf32>
    %cst_106 = arith.constant 5.000000e-01 : f32
    %339 = vector.broadcast %cst_106 : f32 to vector<8x32xf32>
    %340 = arith.mulf %339, %338 : vector<8x32xf32>
    %341 = math.tanh %340 : vector<8x32xf32>
    %cst_107 = arith.constant 5.000000e-01 : f32
    %342 = vector.broadcast %cst_107 : f32 to vector<8x32xf32>
    %343 = arith.mulf %342, %341 : vector<8x32xf32>
    %cst_108 = arith.constant 5.000000e-01 : f32
    %344 = vector.broadcast %cst_108 : f32 to vector<8x32xf32>
    %345 = arith.addf %343, %344 : vector<8x32xf32>
    %346 = vector.extract_strided_slice %337 {offsets = [0, 32], sizes = [8, 32], strides = [1, 1]} : vector<8x128xf32> to vector<8x32xf32>
    %cst_109 = arith.constant 5.000000e-01 : f32
    %347 = vector.broadcast %cst_109 : f32 to vector<8x32xf32>
    %348 = arith.mulf %347, %346 : vector<8x32xf32>
    %349 = math.tanh %348 : vector<8x32xf32>
    %cst_110 = arith.constant 5.000000e-01 : f32
    %350 = vector.broadcast %cst_110 : f32 to vector<8x32xf32>
    %351 = arith.mulf %350, %349 : vector<8x32xf32>
    %cst_111 = arith.constant 5.000000e-01 : f32
    %352 = vector.broadcast %cst_111 : f32 to vector<8x32xf32>
    %353 = arith.addf %351, %352 : vector<8x32xf32>
    %354 = vector.extract_strided_slice %337 {offsets = [0, 64], sizes = [8, 32], strides = [1, 1]} : vector<8x128xf32> to vector<8x32xf32>
    %355 = math.tanh %354 : vector<8x32xf32>
    %356 = vector.extract_strided_slice %337 {offsets = [0, 96], sizes = [8, 32], strides = [1, 1]} : vector<8x128xf32> to vector<8x32xf32>
    %cst_112 = arith.constant 5.000000e-01 : f32
    %357 = vector.broadcast %cst_112 : f32 to vector<8x32xf32>
    %358 = arith.mulf %357, %356 : vector<8x32xf32>
    %359 = math.tanh %358 : vector<8x32xf32>
    %cst_113 = arith.constant 5.000000e-01 : f32
    %360 = vector.broadcast %cst_113 : f32 to vector<8x32xf32>
    %361 = arith.mulf %360, %359 : vector<8x32xf32>
    %cst_114 = arith.constant 5.000000e-01 : f32
    %362 = vector.broadcast %cst_114 : f32 to vector<8x32xf32>
    %363 = arith.addf %361, %362 : vector<8x32xf32>
    %364 = arith.mulf %353, %332 : vector<8x32xf32>
    %365 = arith.mulf %345, %355 : vector<8x32xf32>
    %366 = arith.addf %364, %365 : vector<8x32xf32>
    %367 = math.tanh %366 : vector<8x32xf32>
    %368 = arith.mulf %363, %367 : vector<8x32xf32>
    %369 = arith.addi %14, %c7_i32 : i32
    %370 = vector.broadcast %369 : i32 to vector<8x1xi32>
    %371 = arith.cmpi slt, %370, %13 : vector<8x1xi32>
    %372 = vector.shape_cast %371 : vector<8x1xi1> to vector<8x1xi1>
    %373 = vector.broadcast %372 : vector<8x1xi1> to vector<8x32xi1>
    %374 = arith.select %373, %368, %329 : vector<8x32xi1>, vector<8x32xf32>
    %375 = vector.shape_cast %371 : vector<8x1xi1> to vector<8x1xi1>
    %376 = vector.broadcast %375 : vector<8x1xi1> to vector<8x32xi1>
    %377 = arith.select %376, %366, %332 : vector<8x32xi1>, vector<8x32xf32>
    %c8_i32_115 = arith.constant 8 : i32
    %c0_116 = arith.constant 0 : index
    %c0_117 = arith.constant 0 : index
    %378 = vector.load %arg9[%c0_116, %c0_117] : memref<8x32xf32, #tpu.memory_space<vmem>>, vector<8x32xf32>
    tpu.vector_store %arg9[%c0_116, %c0_117], %374 {strides = array<i32>} : memref<8x32xf32, #tpu.memory_space<vmem>>, vector<8x32xf32>,
    %c0_118 = arith.constant 0 : index
    %c0_119 = arith.constant 0 : index
    %379 = vector.load %arg10[%c0_118, %c0_119] : memref<8x32xf32, #tpu.memory_space<vmem>>, vector<8x32xf32>
    tpu.vector_store %arg10[%c0_118, %c0_119], %377 {strides = array<i32>} : memref<8x32xf32, #tpu.memory_space<vmem>>, vector<8x32xf32>,
    %c0_i32_120 = arith.constant 0 : i32
    %380 = arith.cmpi eq, %arg1, %c0_i32_120 : i32
    %381 = arith.extui %380 : i1 to i32
    %c0_i32_121 = arith.constant 0 : i32
    %382 = arith.cmpi ne, %381, %c0_i32_121 : i32
    scf.if %382 {
      %c0_122 = arith.constant 0 : index
      %c0_123 = arith.constant 0 : index
      %383 = vector.load %arg7[%c0_122, %c0_123] : memref<8x32xf32, #tpu.memory_space<vmem>>, vector<8x32xf32>
      tpu.vector_store %arg7[%c0_122, %c0_123], %374 {strides = array<i32>} : memref<8x32xf32, #tpu.memory_space<vmem>>, vector<8x32xf32>,
    } else {
    }
    return
  }
  func.func @transform_0(%arg0: i32, %arg1: i32) -> (i32, i32, i32) {
    %c0_i32 = arith.constant 0 : i32
    %c0_i32_0 = arith.constant 0 : i32
    return %arg1, %arg0, %c0_i32 : i32, i32, i32
  }
  func.func @transform_1(%arg0: i32, %arg1: i32) -> (i32, i32) {
    %c0_i32 = arith.constant 0 : i32
    %c0_i32_0 = arith.constant 0 : i32
    %c0_i32_1 = arith.constant 0 : i32
    return %c0_i32, %c0_i32_0 : i32, i32
  }
  func.func @transform_2(%arg0: i32, %arg1: i32) -> (i32, i32) {
    %c0_i32 = arith.constant 0 : i32
    %c0_i32_0 = arith.constant 0 : i32
    %c0_i32_1 = arith.constant 0 : i32
    return %c0_i32, %c0_i32_0 : i32, i32
  }
  func.func @transform_3(%arg0: i32, %arg1: i32) -> (i32, i32) {
    %c0_i32 = arith.constant 0 : i32
    %c0_i32_0 = arith.constant 0 : i32
    %c0_i32_1 = arith.constant 0 : i32
    return %c0_i32, %c0_i32_0 : i32, i32
  }
  func.func @transform_4(%arg0: i32, %arg1: i32) -> (i32, i32) {
    %c0_i32 = arith.constant 0 : i32
    %c0_i32_0 = arith.constant 0 : i32
    return %arg0, %c0_i32 : i32, i32
  }
  func.func @transform_5(%arg0: i32, %arg1: i32) -> (i32, i32) {
    %c0_i32 = arith.constant 0 : i32
    %c0_i32_0 = arith.constant 0 : i32
    return %arg0, %c0_i32 : i32, i32
  }
}

</mosaic_0001>

<bundles_post_ra>
// kernel: drnn_encoder_forward.1
= control target key start
LH: loop header
LB: loop body
LE: loop exit
PB: predicated region body
PF: predicated region fallthrough
CT: control target
= control target key end

     0   :  { %vm37_vm0 = vcmask 130048   ;;  %v1388_v0 = vmov 0.0|0.0   ;;  %vm1389_vm1 = vmmov 0   ;;  %v1390_v4 = vmov 0.0   ;;  %s1392_s9 = smov 64   ;;  %s1394_s12 = smov 96   ;;  %s1642_s1 = inlined_call_operand.vmem [shape: f32[16,128], index: 1, kind: input, shape index: {}]   ;;  %s1643_s2 = inlined_call_operand.vmem [shape: f32[32,128], index: 2, kind: input, shape index: {}]   ;;  %s1644_s0 = inlined_call_operand.vmem [shape: f32[8,8,16], index: 0, kind: input, shape index: {}]   ;;  %s1645_s3 = inlined_call_operand.vmem [shape: f32[1,128], index: 3, kind: input, shape index: {}]   ;;  %s1646_s4 = inlined_call_operand.vmem [shape: s32[8,1], index: 4, kind: input, shape index: {}]   ;;  %s1647_s5 = inlined_call_operand.vmem [shape: f32[8,32], index: 5, kind: output, shape index: {}]  }
   0x1   :  { %1283 = vmatprep.subr.bf16.mxu1 %v1388_v0  ;;  %v35_v1 = vld [vmem:[%s1642_s1] sm:$0xff]  ;;  %v36_v2 = vld [vmem:[%s1642_s1 + $0x8] sm:$0xff]  ;;  %1199 = vmatprep.mubr.msk.f32.mxu1 %vm1389_vm1, %v1390_v4  ;;  %vm24_vm2 = vcmask 261120   ;;  %v194_v9 = vld [vmem:[%s1643_s2 + $0x10] sm:$0xff]  ;;  %v1391_v21 = vmov 0  }
   0x2   :  { %v192_v3 = vld [vmem:[%s1643_s2] sm:$0xff]  ;;  %v1279_v5 = vpack.c.bf16 %v36_v2, %v35_v1  ;;  %v193_v6 = vld [vmem:[%s1643_s2 + $0x8] sm:$0xff]  ;;  %25 = vst.msk [vmem:[#allocation3] sm:$0xff] %vm24_vm2, %v1390_v4  ;;  %26 = vst.msk [vmem:[#allocation4] sm:$0xff] %vm24_vm2, %v1390_v4  ;;  %1338 = vset.pattern.permute.xlu1 %v1391_v21  ;;  %1339 = vset.pattern.permute.xlu0 %v1391_v21 }
   0x3   :  { %v27_v7 = vld [vmem:[%s1644_s0] sm:$0xff]  ;;  %v1447_v8 = vpack.c.bf16 %v193_v6, %v192_v3  ;;  %v195_v10 = vld [vmem:[%s1643_s2 + $0x18] sm:$0xff]  ;;  %v28_v11 = vld [vmem:[%s1644_s0 + $0x8] sm:$0xff] }
   0x4   :  { %1179 = vmatprep.mubr.msk.f32.mxu0 %vm37_vm0, %v27_v7  ;;  %1280 = vmatprep.subr.bf16.mxu0 %v1279_v5  ;;  %v1460_v12 = vpack.c.bf16 %v195_v10, %v194_v9  ;;  %v1481_v14 = vld [vmem:[%s1645_s3] ss:$0 sm:$0xff]  ;;  %s1393_s3 = smov 32   ;;  %v29_v59 = vld [vmem:[%s1644_s0 + $0x10] sm:$0xff]  ;;  %v30_v60 = vld [vmem:[%s1644_s0 + $0x18] sm:$0xff] }
   0x5   :  { %1285 = vmatpush3.bf16.msra.mxu1 %v1447_v8  ;;  %1282 = vmatpush3.bf16.msra.mxu0 %v1279_v5  ;;  %v1491_v27 = vld [vmem:[%s1646_s4] sm:$0xff]  ;;  %v32_v62 = vld [vmem:[%s1644_s0 + $0x28] sm:$0xff]  ;;  %v33_v63 = vld [vmem:[%s1644_s0 + $0x30] sm:$0xff] }
   0x6   :  { %1286 = vmatprep.subr.bf16.mxu1 %v1388_v0  ;;  %1295 = vmatprep.subr.bf16.mxu0 %v1388_v0  ;;  %vm1110_vm3 = vcmp.gt.s32.totalorder %v1491_v27, 0  ;;  %vm1112_vm5 = vcmp.gt.s32.totalorder %v1491_v27, 1  ;;  %v31_v61 = vld [vmem:[%s1644_s0 + $0x20] sm:$0xff]  ;;  %v34_v1 = vld [vmem:[%s1644_s0 + $0x38] sm:$0xff]  ;;  %vm1114_vm7 = vcmp.gt.s32.totalorder %v1491_v27, 2  ;;  %vm1116_vm9 = vcmp.gt.s32.totalorder %v1491_v27, 3 }
   0x7   :  { %v302_v31 = vsel %vm1110_vm3, 1, %v1391_v21  ;;  %v415_v48 = vsel %vm1112_vm5, 1, %v1391_v21  ;;  %vm1118_vm11 = vcmp.gt.s32.totalorder %v1491_v27, 4  ;;  %vm1120_vm13 = vcmp.gt.s32.totalorder %v1491_v27, 5 }
   0x8   :  { %1180 = vmatmul.mubr.msk.f32.vlgmr.msra.gmra.mrb[0].mxu0 %vm37_vm0, %v28_v11  ;;  %vm1122_vm15 = vcmp.gt.s32.totalorder %v1491_v27, 6 }
   0x9   :  { %1288 = vmatpush3.bf16.msra.mxu1 %v1460_v12  ;;  %v196_v13 = vld [vmem:[#allocation3] sm:$0xff]  ;;  %1297 = vmatpush3.bf16.msra.mxu0 %v1447_v8  ;;  %v197_v23 = vld [vmem:[#allocation4] sm:$0xff] }
   0xa   :  { %1289 = vmatprep.subr.bf16.mxu1 %v1388_v0  ;;  %1298 = vmatprep.subr.bf16.mxu0 %v1388_v0 }
   0xb   :  { %1182 = vmatprep.mubr.msk.f32.mxu0 %vm37_vm0, %v29_v59 }
   0xc   :  { %1200 = vmatmul.mubr.msk.f32.vlgmr.msra.gmra.mrb[0].mxu1 %vm24_vm2, %v196_v13  ;;  %1183 = vmatmul.mubr.msk.f32.gmra.mrb[2].mxu0 %vm37_vm0, %v30_v60 }
   0xd   :  { %1291 = vmatpush3.bf16.msra.mxu1 %v1447_v8  ;;  %1210 = vmatprep.mubr.msk.f32.mxu1 %vm1389_vm1, %v1390_v4 }
   0xe   :  { %1292 = vmatprep.subr.bf16.mxu1 %v1388_v0  ;;  %1300 = vmatpush3.bf16.msra.mxu0 %v1460_v12 }
   0xf   :  { %1307 = vmatprep.subr.bf16.mxu0 %v1388_v0  ;;  %1185 = vmatprep.mubr.msk.f32.mxu0 %vm37_vm0, %v31_v61 }
  0x10   :  { %1186 = vmatmul.mubr.msk.f32.gmra.mrb[4].mxu0 %vm37_vm0, %v32_v62 }
  0x11   :  { %1294 = vmatpush3.bf16.msra.mxu1 %v1460_v12  ;;  %1188 = vmatprep.mubr.msk.f32.mxu0 %vm37_vm0, %v33_v63 }
  0x12   :  { %1301 = vmatprep.subr.bf16.mxu1 %v1388_v0 }
  0x14   :  { %1189 = vmatmul.mubr.msk.f32.gmra.mrb[6].mxu0 %vm37_vm0, %v34_v1 }
  0x15   :  { %1221 = vmatprep.mubr.msk.f32.mxu0 %vm1389_vm1, %v1390_v4 }
  0xdb   :  { %v1181_v15 = vpop.f32.mrb[0].mxu0 }
  0xdc   :  { %v128_v16 = vpop.f32.mrb[1].mxu0  ;;  %v175_v43 = vadd.f32 %v1181_v15, %v1481_v14 }
  0xdd   :  { %v174_v17 = vadd.f32 %v1481_v14, %v128_v16 }
  0xdf   :  { %v268_v18 = vpop.f32.mrb[0].mxu1  ;;  %v1184_v9 = vpop.f32.mrb[2].mxu0 }
  0xe0   :  { %v273_v19 = vadd.f32 %v268_v18, %v174_v17  ;;  %v1201_v20 = vpop.f32.mrb[1].mxu1  ;;  %v138_v10 = vpop.f32.mrb[3].mxu0 }
  0xe1   :  { %v176_v18 = vadd.f32 %v1481_v14, %v138_v10 }
  0xe2   :  { %1340 = vtanh.f32 %v273_v19  ;;  %v274_v24 = vmul.f32 0.5, %v273_v19 }
  0xe3   :  { %v1542_v11 = vpop.f32.mrb[4].mxu0 }
  0xe4   :  { %1342 = vtanh.f32 %v274_v24  ;;  %v525_v24 = vsel %vm1114_vm7, 1, %v1391_v21 }
  0xec   :  { %v1341_v22 = vpop.eup %1340 }
  0xed   :  { %285 = vrot.lane.b32.xlu0 %v1341_v22, %s1392_s9 }
  0xee   :  { %v1343_v25 = vpop.eup %1342 }
  0xef   :  { %v276_v26 = vmul.f32 0.5, %v1343_v25 }
  0xf1   :  { %280 = vrot.lane.b32.xlu0 %v197_v23, %s1393_s3  ;;  %v277_v28 = vadd.f32 0.5, %v276_v26 }
 0x15f   :  { %v286_v29 = vpop.permute.xlu0 %285 }
 0x160   :  { %v288_v30 = vmul.f32 %v286_v29, %v277_v28 }
 0x162   :  { %290 = vrot.lane.b32.xlu1 %v288_v30, %s1393_s3 }
 0x163   :  { %v281_v32 = vpop.permute.xlu0 %280 }
 0x164   :  { %v283_v33 = vmul.f32 %v281_v32, %v277_v28 }
 0x166   :  { %304 = vperm.xlu1 %1338, %v302_v31  }
 0x16a   :  { %307 = vrot.lane.b32.xlu1 %v196_v13, %s1394_s12  ;;  %v1544_v13 = vpop.f32.mrb[5].mxu0 }
 0x16b   :  { %v1546_v15 = vpop.f32.mrb[6].mxu0  ;;  %v178_v1 = vadd.f32 %v1481_v14, %v1544_v13 }
 0x16c   :  { %v1548_v16 = vpop.f32.mrb[7].mxu0 }
 0x1d4   :  { %v291_v34 = vpop.permute.xlu1 %290 }
 0x1d5   :  { %v293_v35 = vadd.f32 %v291_v34, %v283_v33 }
 0x1d7   :  { %1344 = vtanh.f32 %v293_v35 }
 0x1e1   :  { %v1345_v36 = vpop.eup %1344 }
 0x1e2   :  { %296 = vrot.lane.b32.xlu0 %v1345_v36, %s1392_s9 }
 0x1e5   :  { %v305_v37 = vpop.permute.xlu1 %304 }
 0x1e6   :  { %vm306_vm4 = vcmp.eq.s32.totalorder %v305_v37, 1 }
 0x1e7   :  { %v311_v55 = vsel %vm306_vm4, %v293_v35, %v281_v32 }
 0x1e9   :  { %v308_v39 = vpop.permute.xlu1 %307 }
 0x254   :  { %v297_v38 = vpop.permute.xlu0 %296 }
 0x255   :  { %v299_v40 = vmul.f32 %v297_v38, %v277_v28 }
 0x257   :  { %v310_v41 = vsel %vm306_vm4, %v299_v40, %v308_v39 }
 0x258   :  { %313 = vrot.lane.b32.xlu0 %v310_v41, %s1393_s3 }
 0x2ca   :  { %v314_v42 = vpop.permute.xlu0 %313 }
 0x2cb   :  { %1211 = vmatmul.mubr.msk.f32.vlgmr.msra.gmra.mrb[2].mxu1 %vm24_vm2, %v314_v42  ;;  %v177_v42 = vadd.f32 %v1184_v9, %v1481_v14 }
 0x2cc   :  { %1303 = vmatpush3.bf16.msra.mxu1 %v1447_v8  ;;  %1232 = vmatprep.mubr.msk.f32.mxu1 %vm1389_vm1, %v1390_v4 }
 0x2cd   :  { %1304 = vmatprep.subr.bf16.mxu1 %v1388_v0 }
 0x2d0   :  { %1306 = vmatpush3.bf16.msra.mxu1 %v1460_v12 }
 0x2d1   :  { %1313 = vmatprep.subr.bf16.mxu1 %v1388_v0 }
 0x39e   :  { %v383_v44 = vpop.f32.mrb[2].mxu1 }
 0x39f   :  { %v389_v45 = vadd.f32 %v383_v44, %v175_v43  ;;  %v1212_v46 = vpop.f32.mrb[3].mxu1 }
 0x3a1   :  { %1346 = vtanh.f32 %v389_v45  ;;  %v390_v49 = vmul.f32 0.5, %v389_v45 }
 0x3a3   :  { %1348 = vtanh.f32 %v390_v49 }
 0x3ab   :  { %v1347_v47 = vpop.eup %1346 }
 0x3ac   :  { %397 = vrot.lane.b32.xlu1 %v1347_v47, %s1392_s9  ;;  %v635_v47 = vsel %vm1116_vm9, 1, %v1391_v21 }
 0x3ad   :  { %v1349_v50 = vpop.eup %1348 }
 0x3ae   :  { %v392_v51 = vmul.f32 0.5, %v1349_v50 }
 0x3b0   :  { %417 = vperm.xlu1 %1338, %v415_v48   ;;  %v393_v52 = vadd.f32 0.5, %v392_v51 }
 0x3b2   :  { %v395_v56 = vmul.f32 %v393_v52, %v311_v55 }
 0x41e   :  { %v398_v53 = vpop.permute.xlu1 %397 }
 0x41f   :  { %v400_v54 = vmul.f32 %v398_v53, %v393_v52 }
 0x421   :  { %402 = vrot.lane.b32.xlu0 %v400_v54, %s1393_s3 }
 0x42f   :  { %v418_v3 = vpop.permute.xlu1 %417 }
 0x430   :  { %vm419_vm6 = vcmp.eq.s32.totalorder %v418_v3, 1 }
 0x493   :  { %v403_v57 = vpop.permute.xlu0 %402 }
 0x494   :  { %v405_v58 = vadd.f32 %v403_v57, %v395_v56 }
 0x496   :  { %1350 = vtanh.f32 %v405_v58  ;;  %v421_v32 = vsel %vm419_vm6, %v405_v58, %v311_v55 }
 0x4a0   :  { %v1351_v2 = vpop.eup %1350 }
 0x4a1   :  { %408 = vrot.lane.b32.xlu0 %v1351_v2, %s1392_s9 }
 0x513   :  { %v409_v5 = vpop.permute.xlu0 %408 }
 0x514   :  { %v411_v6 = vmul.f32 %v409_v5, %v393_v52 }
 0x516   :  { %v420_v7 = vsel %vm419_vm6, %v411_v6, %v310_v41 }
 0x517   :  { %423 = vrot.lane.b32.xlu1 %v420_v7, %s1393_s3 }
 0x589   :  { %v424_v17 = vpop.permute.xlu1 %423 }
 0x58a   :  { %1222 = vmatmul.mubr.msk.f32.vlgmr.msra.gmra.mrb[8].mxu0 %vm24_vm2, %v424_v17 }
 0x58b   :  { %1309 = vmatpush3.bf16.msra.mxu0 %v1447_v8  ;;  %1243 = vmatprep.mubr.msk.f32.mxu0 %vm1389_vm1, %v1390_v4 }
 0x58c   :  { %1310 = vmatprep.subr.bf16.mxu0 %v1388_v0 }
 0x58f   :  { %1312 = vmatpush3.bf16.msra.mxu0 %v1460_v12 }
 0x590   :  { %1319 = vmatprep.subr.bf16.mxu0 %v1388_v0 }
 0x65d   :  { %v493_v19 = vpop.f32.mrb[8].mxu0 }
 0x65e   :  { %v499_v20 = vadd.f32 %v493_v19, %v176_v18  ;;  %v1223_v22 = vpop.f32.mrb[9].mxu0 }
 0x660   :  { %1352 = vtanh.f32 %v499_v20  ;;  %v500_v25 = vmul.f32 0.5, %v499_v20 }
 0x662   :  { %1354 = vtanh.f32 %v500_v25 }
 0x66a   :  { %v1353_v23 = vpop.eup %1352 }
 0x66b   :  { %507 = vrot.lane.b32.xlu0 %v1353_v23, %s1392_s9 }
 0x66c   :  { %v1355_v26 = vpop.eup %1354 }
 0x66d   :  { %v502_v28 = vmul.f32 0.5, %v1355_v26 }
 0x66f   :  { %527 = vperm.xlu0 %1339, %v525_v24   ;;  %v503_v29 = vadd.f32 0.5, %v502_v28 }
 0x671   :  { %v505_v33 = vmul.f32 %v503_v29, %v421_v32 }
 0x6dd   :  { %v508_v30 = vpop.permute.xlu0 %507 }
 0x6de   :  { %v510_v31 = vmul.f32 %v508_v30, %v503_v29 }
 0x6e0   :  { %512 = vrot.lane.b32.xlu1 %v510_v31, %s1393_s3 }
 0x6ee   :  { %v528_v37 = vpop.permute.xlu0 %527 }
 0x6ef   :  { %vm529_vm8 = vcmp.eq.s32.totalorder %v528_v37, 1 }
 0x752   :  { %v513_v34 = vpop.permute.xlu1 %512 }
 0x753   :  { %v515_v35 = vadd.f32 %v513_v34, %v505_v33 }
 0x755   :  { %1356 = vtanh.f32 %v515_v35  ;;  %v531_v54 = vsel %vm529_vm8, %v515_v35, %v421_v32  ;;  %v179_v32 = vadd.f32 %v1542_v11, %v1481_v14 }
 0x75f   :  { %v1357_v36 = vpop.eup %1356 }
 0x760   :  { %518 = vrot.lane.b32.xlu1 %v1357_v36, %s1392_s9 }
 0x7d2   :  { %v519_v38 = vpop.permute.xlu1 %518 }
 0x7d3   :  { %v521_v39 = vmul.f32 %v519_v38, %v503_v29 }
 0x7d5   :  { %v530_v40 = vsel %vm529_vm8, %v521_v39, %v420_v7  ;;  %v745_v7 = vsel %vm1118_vm11, 1, %v1391_v21 }
 0x7d6   :  { %533 = vrot.lane.b32.xlu1 %v530_v40, %s1393_s3 }
 0x848   :  { %v534_v41 = vpop.permute.xlu1 %533 }
 0x849   :  { %1233 = vmatmul.mubr.msk.f32.vlgmr.msra.gmra.mrb[4].mxu1 %vm24_vm2, %v534_v41 }
 0x84a   :  { %1315 = vmatpush3.bf16.msra.mxu1 %v1447_v8  ;;  %1254 = vmatprep.mubr.msk.f32.mxu1 %vm1389_vm1, %v1390_v4 }
 0x84b   :  { %1316 = vmatprep.subr.bf16.mxu1 %v1388_v0 }
 0x84e   :  { %1318 = vmatpush3.bf16.msra.mxu1 %v1460_v12 }
 0x84f   :  { %1325 = vmatprep.subr.bf16.mxu1 %v1388_v0 }
 0x91c   :  { %v603_v43 = vpop.f32.mrb[4].mxu1 }
 0x91d   :  { %v609_v44 = vadd.f32 %v603_v43, %v177_v42  ;;  %v1234_v45 = vpop.f32.mrb[5].mxu1 }
 0x91f   :  { %1358 = vtanh.f32 %v609_v44  ;;  %v610_v48 = vmul.f32 0.5, %v609_v44 }
 0x921   :  { %1360 = vtanh.f32 %v610_v48 }
 0x929   :  { %v1359_v46 = vpop.eup %1358 }
 0x92a   :  { %617 = vrot.lane.b32.xlu0 %v1359_v46, %s1392_s9 }
 0x92b   :  { %v1361_v49 = vpop.eup %1360 }
 0x92c   :  { %v612_v50 = vmul.f32 0.5, %v1361_v49  ;;  %v180_v49 = vadd.f32 %v1481_v14, %v1548_v16 }
 0x92e   :  { %637 = vperm.xlu0 %1339, %v635_v47   ;;  %v613_v51 = vadd.f32 0.5, %v612_v50 }
 0x930   :  { %v615_v55 = vmul.f32 %v613_v51, %v531_v54 }
 0x99c   :  { %v618_v52 = vpop.permute.xlu0 %617 }
 0x99d   :  { %v620_v53 = vmul.f32 %v618_v52, %v613_v51 }
 0x99f   :  { %622 = vrot.lane.b32.xlu1 %v620_v53, %s1393_s3 }
 0x9ad   :  { %v638_v59 = vpop.permute.xlu0 %637 }
 0x9ae   :  { %vm639_vm10 = vcmp.eq.s32.totalorder %v638_v59, 1 }
 0xa11   :  { %v623_v56 = vpop.permute.xlu1 %622 }
 0xa12   :  { %v625_v57 = vadd.f32 %v623_v56, %v615_v55 }
 0xa14   :  { %1362 = vtanh.f32 %v625_v57  ;;  %v641_v13 = vsel %vm639_vm10, %v625_v57, %v531_v54  ;;  %v965_v54 = vsel %vm1122_vm15, 1, %v1391_v21 }
 0xa1e   :  { %v1363_v58 = vpop.eup %1362 }
 0xa1f   :  { %628 = vrot.lane.b32.xlu1 %v1363_v58, %s1392_s9 }
 0xa91   :  { %v629_v60 = vpop.permute.xlu1 %628 }
 0xa92   :  { %v631_v61 = vmul.f32 %v629_v60, %v613_v51 }
 0xa94   :  { %v640_v62 = vsel %vm639_vm10, %v631_v61, %v530_v40 }
 0xa95   :  { %643 = vrot.lane.b32.xlu0 %v640_v62, %s1393_s3 }
 0xb07   :  { %v644_v63 = vpop.permute.xlu0 %643 }
 0xb08   :  { %1244 = vmatmul.mubr.msk.f32.vlgmr.msra.gmra.mrb[10].mxu0 %vm24_vm2, %v644_v63 }
 0xb09   :  { %1321 = vmatpush3.bf16.msra.mxu0 %v1447_v8  ;;  %1265 = vmatprep.mubr.msk.f32.mxu0 %vm1389_vm1, %v1390_v4 }
 0xb0a   :  { %1322 = vmatprep.subr.bf16.mxu0 %v1388_v0 }
 0xb0d   :  { %1324 = vmatpush3.bf16.msra.mxu0 %v1460_v12 }
 0xbdb   :  { %v713_v2 = vpop.f32.mrb[10].mxu0 }
 0xbdc   :  { %v719_v3 = vadd.f32 %v713_v2, %v178_v1  ;;  %v1245_v5 = vpop.f32.mrb[11].mxu0 }
 0xbde   :  { %1364 = vtanh.f32 %v719_v3  ;;  %v720_v9 = vmul.f32 0.5, %v719_v3 }
 0xbe0   :  { %1366 = vtanh.f32 %v720_v9  ;;  %v181_v9 = vadd.f32 %v1546_v15, %v1481_v14 }
 0xbe8   :  { %v1365_v6 = vpop.eup %1364 }
 0xbe9   :  { %727 = vrot.lane.b32.xlu1 %v1365_v6, %s1392_s9 }
 0xbea   :  { %v1367_v10 = vpop.eup %1366 }
 0xbeb   :  { %v722_v17 = vmul.f32 0.5, %v1367_v10 }
 0xbed   :  { %747 = vperm.xlu1 %1338, %v745_v7   ;;  %v723_v18 = vadd.f32 0.5, %v722_v17 }
 0xbef   :  { %v725_v22 = vmul.f32 %v723_v18, %v641_v13 }
 0xc5b   :  { %v728_v19 = vpop.permute.xlu1 %727 }
 0xc5c   :  { %v730_v20 = vmul.f32 %v728_v19, %v723_v18 }
 0xc5e   :  { %732 = vrot.lane.b32.xlu0 %v730_v20, %s1393_s3 }
 0xc6c   :  { %v748_v26 = vpop.permute.xlu1 %747 }
 0xc6d   :  { %vm749_vm12 = vcmp.eq.s32.totalorder %v748_v26, 1 }
 0xcd0   :  { %v733_v23 = vpop.permute.xlu0 %732 }
 0xcd1   :  { %v735_v24 = vadd.f32 %v733_v23, %v725_v22 }
 0xcd3   :  { %1368 = vtanh.f32 %v735_v24  ;;  %v751_v11 = vsel %vm749_vm12, %v735_v24, %v641_v13 }
 0xcdd   :  { %v1369_v25 = vpop.eup %1368 }
 0xcde   :  { %738 = vrot.lane.b32.xlu0 %v1369_v25, %s1392_s9 }
 0xd50   :  { %v739_v28 = vpop.permute.xlu0 %738 }
 0xd51   :  { %v741_v29 = vmul.f32 %v739_v28, %v723_v18 }
 0xd53   :  { %v750_v30 = vsel %vm749_vm12, %v741_v29, %v640_v62 }
 0xd54   :  { %753 = vrot.lane.b32.xlu1 %v750_v30, %s1393_s3 }
 0xdc6   :  { %v754_v31 = vpop.permute.xlu1 %753 }
 0xdc7   :  { %1255 = vmatmul.mubr.msk.f32.vlgmr.msra.gmra.mrb[6].mxu1 %vm24_vm2, %v754_v31 }
 0xdc8   :  { %1327 = vmatpush3.bf16.msra.mxu1 %v1447_v8  ;;  %1276 = vmatprep.mubr.msk.f32.mxu1 %vm1389_vm1, %v1390_v4  ;;  %v855_v8 = vsel %vm1120_vm13, 1, %v1391_v21  ;;  %vm1124_vm1 = vcmp.gt.s32.totalorder %v1491_v27, 7 }
 0xdc9   :  { %1328 = vmatprep.subr.bf16.mxu1 %v1388_v0  ;;  %v1075_v20 = vsel %vm1124_vm1, 1, %v1391_v21 }
 0xdcc   :  { %1330 = vmatpush3.bf16.msra.mxu1 %v1460_v12 }
 0xe9a   :  { %v823_v33 = vpop.f32.mrb[6].mxu1 }
 0xe9b   :  { %v829_v34 = vadd.f32 %v823_v33, %v179_v32  ;;  %v1256_v35 = vpop.f32.mrb[7].mxu1 }
 0xe9d   :  { %1370 = vtanh.f32 %v829_v34  ;;  %v830_v4 = vmul.f32 0.5, %v829_v34 }
 0xe9f   :  { %1372 = vtanh.f32 %v830_v4 }
 0xea7   :  { %v1371_v36 = vpop.eup %1370 }
 0xea8   :  { %837 = vrot.lane.b32.xlu0 %v1371_v36, %s1392_s9 }
 0xea9   :  { %v1373_v0 = vpop.eup %1372 }
 0xeaa   :  { %v832_v37 = vmul.f32 0.5, %v1373_v0 }
 0xeac   :  { %857 = vperm.xlu0 %1339, %v855_v8   ;;  %v833_v12 = vadd.f32 0.5, %v832_v37 }
 0xeae   :  { %v835_v40 = vmul.f32 %v833_v12, %v751_v11 }
 0xf1a   :  { %v838_v38 = vpop.permute.xlu0 %837 }
 0xf1b   :  { %v840_v39 = vmul.f32 %v838_v38, %v833_v12 }
 0xf1d   :  { %842 = vrot.lane.b32.xlu1 %v840_v39, %s1393_s3 }
 0xf2b   :  { %v858_v44 = vpop.permute.xlu0 %857 }
 0xf2c   :  { %vm859_vm14 = vcmp.eq.s32.totalorder %v858_v44, 1 }
 0xf8f   :  { %v843_v41 = vpop.permute.xlu1 %842 }
 0xf90   :  { %v845_v42 = vadd.f32 %v843_v41, %v835_v40 }
 0xf92   :  { %1374 = vtanh.f32 %v845_v42  ;;  %v861_v16 = vsel %vm859_vm14, %v845_v42, %v751_v11 }
 0xf9c   :  { %v1375_v43 = vpop.eup %1374 }
 0xf9d   :  { %848 = vrot.lane.b32.xlu1 %v1375_v43, %s1392_s9 }
0x100f   :  { %v849_v45 = vpop.permute.xlu1 %848 }
0x1010   :  { %v851_v46 = vmul.f32 %v849_v45, %v833_v12 }
0x1012   :  { %v860_v47 = vsel %vm859_vm14, %v851_v46, %v750_v30 }
0x1013   :  { %863 = vrot.lane.b32.xlu0 %v860_v47, %s1393_s3 }
0x1085   :  { %v864_v48 = vpop.permute.xlu0 %863 }
0x1086   :  { %1266 = vmatmul.mubr.msk.f32.vlgmr.msra.gmra.mrb[12].mxu0 %vm24_vm2, %v864_v48 }
0x1159   :  { %v933_v50 = vpop.f32.mrb[12].mxu0 }
0x115a   :  { %v939_v51 = vadd.f32 %v933_v50, %v180_v49  ;;  %v1267_v52 = vpop.f32.mrb[13].mxu0 }
0x115c   :  { %1376 = vtanh.f32 %v939_v51  ;;  %v940_v55 = vmul.f32 0.5, %v939_v51 }
0x115e   :  { %1378 = vtanh.f32 %v940_v55 }
0x1166   :  { %v1377_v53 = vpop.eup %1376 }
0x1167   :  { %947 = vrot.lane.b32.xlu1 %v1377_v53, %s1392_s9 }
0x1168   :  { %v1379_v56 = vpop.eup %1378 }
0x1169   :  { %v942_v57 = vmul.f32 0.5, %v1379_v56 }
0x116b   :  { %967 = vperm.xlu1 %1338, %v965_v54   ;;  %v943_v58 = vadd.f32 0.5, %v942_v57 }
0x116d   :  { %v945_v61 = vmul.f32 %v943_v58, %v861_v16 }
0x11d9   :  { %v948_v59 = vpop.permute.xlu1 %947 }
0x11da   :  { %v950_v60 = vmul.f32 %v948_v59, %v943_v58 }
0x11dc   :  { %952 = vrot.lane.b32.xlu0 %v950_v60, %s1393_s3 }
0x11ea   :  { %v968_v2 = vpop.permute.xlu1 %967 }
0x11eb   :  { %vm969_vm0 = vcmp.eq.s32.totalorder %v968_v2, 1 }
0x124e   :  { %v953_v62 = vpop.permute.xlu0 %952 }
0x124f   :  { %v955_v63 = vadd.f32 %v953_v62, %v945_v61 }
0x1251   :  { %1380 = vtanh.f32 %v955_v63  ;;  %v971_v14 = vsel %vm969_vm0, %v955_v63, %v861_v16 }
0x125b   :  { %v1381_v1 = vpop.eup %1380 }
0x125c   :  { %958 = vrot.lane.b32.xlu0 %v1381_v1, %s1392_s9 }
0x12ce   :  { %v959_v3 = vpop.permute.xlu0 %958 }
0x12cf   :  { %v961_v5 = vmul.f32 %v959_v3, %v943_v58 }
0x12d1   :  { %v970_v6 = vsel %vm969_vm0, %v961_v5, %v860_v47 }
0x12d2   :  { %973 = vrot.lane.b32.xlu1 %v970_v6, %s1393_s3 }
0x1344   :  { %v974_v7 = vpop.permute.xlu1 %973 }
0x1345   :  { %1277 = vmatmul.mubr.msk.f32.vlgmr.msra.gmra.mrb[8].mxu1 %vm24_vm2, %v974_v7 }
0x1418   :  { %v1043_v10 = vpop.f32.mrb[8].mxu1 }
0x1419   :  { %v1049_v17 = vadd.f32 %v1043_v10, %v181_v9  ;;  %v1278_v18 = vpop.f32.mrb[9].mxu1 }
0x141b   :  { %1382 = vtanh.f32 %v1049_v17  ;;  %v1050_v13 = vmul.f32 0.5, %v1049_v17 }
0x141d   :  { %1384 = vtanh.f32 %v1050_v13 }
0x1425   :  { %v1383_v19 = vpop.eup %1382 }
0x1426   :  { %1057 = vrot.lane.b32.xlu0 %v1383_v19, %s1392_s9 }
0x1427   :  { %v1385_v22 = vpop.eup %1384 }
0x1428   :  { %v1052_v23 = vmul.f32 0.5, %v1385_v22 }
0x142a   :  { %1077 = vperm.xlu0 %1339, %v1075_v20   ;;  %v1053_v24 = vadd.f32 0.5, %v1052_v23 }
0x142c   :  { %v1055_v15 = vmul.f32 %v1053_v24, %v971_v14 }
0x1498   :  { %v1058_v25 = vpop.permute.xlu0 %1057 }
0x1499   :  { %v1060_v26 = vmul.f32 %v1058_v25, %v1053_v24 }
0x149b   :  { %1062 = vrot.lane.b32.xlu1 %v1060_v26, %s1393_s3 }
0x14a9   :  { %v1078_v30 = vpop.permute.xlu0 %1077 }
0x14aa   :  { %vm1079_vm3 = vcmp.eq.s32.totalorder %v1078_v30, 1 }
0x150d   :  { %v1063_v28 = vpop.permute.xlu1 %1062 }
0x150e   :  { %v1065_v27 = vadd.f32 %v1063_v28, %v1055_v15 }
0x1510   :  { %1386 = vtanh.f32 %v1065_v27  ;;  %v1081_v21 = vsel %vm1079_vm3, %v1065_v27, %v971_v14 }
0x151a   :  { %v1387_v29 = vpop.eup %1386 }
0x151b   :  { %1068 = vrot.lane.b32.xlu1 %v1387_v29, %s1392_s9 }
0x151f   :  { %1088 = vrot.lane.b32.xlu1 %v1081_v21, %s1394_s12 }
0x158d   :  { %v1069_v31 = vpop.permute.xlu1 %1068 }
0x158e   :  { %v1071_v32 = vmul.f32 %v1069_v31, %v1053_v24 }
0x1590   :  { %v1080_v33 = vsel %vm1079_vm3, %v1071_v32, %v970_v6 }
0x1591   :  { %1083 = vrot.lane.b32.xlu0 %v1080_v33, %s1393_s3  ;;  %v1089_v34 = vpop.permute.xlu1 %1088 }
0x1592   :  { %1091 = vst.msk [vmem:[#allocation4] sm:$0xff] %vm24_vm2, %v1089_v34 }
0x1603   :  { %v1084_v35 = vpop.permute.xlu0 %1083 }
0x1604   :  { %1086 = vst.msk [vmem:[#allocation3] sm:$0xff] %vm24_vm2, %v1084_v35  ;;  %1095 = vst.msk [vmem:[%s1647_s5] sm:$0xff] %vm24_vm2, %v1084_v35 }

</bundles_post_ra>
